<compile_context>
chip_gen: v7x
topology: tpu7x:2x2x1
jax: 0.10.0
libtpu: 0.0.40
codegen_flags: <defaults>
</compile_context>

<pallas_src>
import functools
import math

import numpy as np

import jax
import jax.numpy as jnp
from jax.experimental import pallas as pl
from jax.experimental.pallas import tpu as pltpu


def _round_up(x, mult):
    return ((x + mult - 1) // mult) * mult


def _make_masked_sse_kernel(tm, L, g, use_mxu):
    """Build the per-core partial masked-SSE / masked-row-count kernel.

    grid = (C, T): C = leading 'parallel' axis (one output lane-block per core),
                   T = 'arbitrary' row-tile reduction axis.
    refs (in order):
      x_ref, y_ref : (tm, L) data tiles (any float dtype; upcast to f32 here)
      m_ref        : (tm, g) bf16 {0,1} row mask (one value per original row)
      e_ref        : (g, L) bf16 0/1 expansion matrix   [only when use_mxu]
      out_ref      : (1, 128) f32; lane 0 = partial SSE, lane 1 = partial rows
      acc_ref      : (8, L) f32 VMEM accumulator
      macc_ref     : (8, g) f32 VMEM mask accumulator
    """
    nseg = tm // 8

    def kernel(*refs):
        if use_mxu:
            x_ref, y_ref, m_ref, e_ref, out_ref, acc_ref, macc_ref = refs
        else:
            x_ref, y_ref, m_ref, out_ref, acc_ref, macc_ref = refs

        i = pl.program_id(1)

        @pl.when(i == 0)
        def _init():
            acc_ref[...] = jnp.zeros_like(acc_ref)
            macc_ref[...] = jnp.zeros_like(macc_ref)

        x = x_ref[...].astype(jnp.float32)
        y = y_ref[...].astype(jnp.float32)
        diff = x - y
        sq = diff * diff                                    # (tm, L) f32

        m_bf = m_ref[...]                                   # (tm, g) bf16 0/1
        if use_mxu:
            # MXU mask expansion: lane l of row r gets m[r, l // d].
            # bf16 x bf16 -> f32 is exact for 0/1 values; the matmul uses the
            # otherwise idle MXU pipe, keeping the VPU free for the data path.
            mexp = jnp.dot(m_bf, e_ref[...],
                           preferred_element_type=jnp.float32)
        else:
            # g == 1 (broadcast mask over lanes) or rep == 1 (mask already
            # lane-aligned, g == L): a plain cast suffices.
            mexp = m_bf.astype(jnp.float32)

        contrib = sq * mexp                                 # (tm, L) f32
        # Collapse the row tile into an (8, L) accumulator: the reshape matches
        # the native 8-row vreg tiling and the axis-0 sum is plain cross-vreg
        # adds, so the VALU cost is unchanged but accumulator ld/st traffic and
        # VMEM footprint drop by tm/8.
        acc_ref[...] += jnp.sum(contrib.reshape(nseg, 8, L), axis=0)
        mf = m_bf.astype(jnp.float32)
        macc_ref[...] += jnp.sum(mf.reshape(nseg, 8, g), axis=0)

        @pl.when(i == pl.num_programs(1) - 1)
        def _finalize():
            sse = jnp.sum(acc_ref[...])
            rows = jnp.sum(macc_ref[...])
            lane = jax.lax.broadcasted_iota(jnp.int32, out_ref.shape, 1)
            out_ref[...] = jnp.where(lane == 0, sse,
                                     jnp.where(lane == 1, rows, 0.0))

    return kernel


def _device_kind():
    try:
        return jax.devices()[0].device_kind.lower()
    except Exception:
        return ""


def masked_mse_metric(outputs, targets, precondition, *,
                      target_block_bytes=None, num_cores=None):
    """metric(outputs[precondition], targets[precondition]) with MSE(mean);
    returns zeros(1) in outputs.dtype when precondition.sum() == 0."""
    outputs = jnp.asarray(outputs)
    targets = jnp.asarray(targets)
    if outputs.ndim == 1:
        outputs = outputs[:, None]
        targets = targets[:, None]
    assert outputs.ndim == 2 and outputs.shape == targets.shape
    n, d = outputs.shape
    out_dtype = outputs.dtype

    kind = _device_kind()
    if num_cores is None:
        # Only v7x has 2 TensorCores per chip; splitting on 1-TC chips is a
        # purely sequential duplicate of init/finalize.
        num_cores = 2 if "v7" in kind else 1
    if target_block_bytes is None:
        # ~4 MB/input on v7x (3.2 TB/s HBM -> amortize the ~0.35 us/step
        # overhead), ~2 MB elsewhere (>=93% of roofline measured on v6e).
        target_block_bytes = (4 << 20) if "v7" in kind else (2 << 20)

    # squeeze_if_needed equivalent: 2-D masks take column 0 (same as torch).
    pre = jnp.asarray(precondition)
    if pre.ndim == 2:
        pre = pre[:, 0]
    # bf16 represents 0/1 exactly and halves mask HBM bytes vs f32.
    mask = pre.astype(jnp.bfloat16)                         # (N,)

    # ---- lane-dense repack ------------------------------------------------
    # (N, d) -> (N/g, L) with L = lcm(d, 128), g = L // d: every tile/DMA is
    # lane-dense for any narrow d (1, 2, 4, ..., 48, 96, ...).  The row mask
    # stays one value per original row: (N,) -> (N/g, g).
    lcm = d * 128 // math.gcd(d, 128)
    if d < 128 and lcm <= 1024:
        L, g = lcm, lcm // d
    else:
        L, g = d, 1
    use_mxu = (g > 1) and (d > 1)          # d == 1 -> mask is already per-lane
    # Pad mask columns to a multiple of 16 for a cleanly tiled bf16 matmul
    # contraction dim (zero columns / zero E rows contribute nothing).
    g_pad = _round_up(g, 16) if use_mxu else g

    itemsize = jnp.dtype(outputs.dtype).itemsize
    r0 = -(-n // g)                                          # lane-dense rows
    tm = max(8, (target_block_bytes // max(1, L * itemsize)) // 8 * 8)
    n_cores = num_cores if r0 >= num_cores * 8 else 1
    rows_per_core = -(-r0 // n_cores)
    tm = min(tm, _round_up(rows_per_core, 8))
    t_tiles = -(-rows_per_core // tm)                        # row tiles / core
    r_pad = n_cores * t_tiles * tm
    n_pad = r_pad * g

    # Exact zero-mask padding for arbitrary N (padded rows add 0 to both sums).
    if n_pad != n:
        outputs = jnp.pad(outputs, ((0, n_pad - n), (0, 0)))
        targets = jnp.pad(targets, ((0, n_pad - n), (0, 0)))
        mask = jnp.pad(mask, (0, n_pad - n))

    x = outputs.reshape(r_pad, L)                            # free row-major reshape
    y = targets.reshape(r_pad, L)
    m = mask.reshape(r_pad, g)
    if g_pad != g:
        m = jnp.pad(m, ((0, 0), (0, g_pad - g)))

    operands = [x, y, m]
    in_specs = [
        pl.BlockSpec((tm, L), lambda c, i: (c * t_tiles + i, 0)),
        pl.BlockSpec((tm, L), lambda c, i: (c * t_tiles + i, 0)),
        pl.BlockSpec((tm, g_pad), lambda c, i: (c * t_tiles + i, 0)),
    ]
    if use_mxu:
        # E[j, l] = 1 iff lane l belongs to mask column j (padding rows are 0).
        e_np = (np.arange(L)[None, :] // d == np.arange(g_pad)[:, None])
        e = jnp.asarray(e_np.astype(np.float32), dtype=jnp.bfloat16)
        operands.append(e)
        in_specs.append(pl.BlockSpec((g_pad, L), lambda c, i: (0, 0)))

    kernel = _make_masked_sse_kernel(tm, L, g_pad, use_mxu)

    # Explicit scoped-VMEM budget: 2 inputs x 2 buffers x block + mask + E +
    # a generous allowance for f32 intermediates inside the body.  (v5e's
    # default scoped limit is only 16 MiB, so set it explicitly.)
    in_bytes = 2 * (2 * tm * L * itemsize) + 2 * tm * g_pad * 2
    if use_mxu:
        in_bytes += 2 * g_pad * L * 2
    temp_bytes = 6 * tm * L * 4
    vmem_limit = int(min(48 << 20, max(32 << 20, in_bytes + temp_bytes + (1 << 20))))

    cost = pl.CostEstimate(
        flops=int(3 * r_pad * L),
        transcendentals=0,
        bytes_accessed=int(2 * r_pad * L * itemsize + r_pad * g_pad * 2
                           + n_cores * 128 * 4),
    )

    partials = pl.pallas_call(
        kernel,
        out_shape=jax.ShapeDtypeStruct((1, n_cores * 128), jnp.float32),
        grid_spec=pltpu.PrefetchScalarGridSpec(
            num_scalar_prefetch=0,
            grid=(n_cores, t_tiles),
            in_specs=in_specs,
            out_specs=pl.BlockSpec((1, 128), lambda c, i: (0, c)),
            scratch_shapes=[
                pltpu.VMEM((8, L), jnp.float32),
                pltpu.VMEM((8, g_pad), jnp.float32),
            ],
        ),
        compiler_params=pltpu.CompilerParams(
            dimension_semantics=("parallel", "arbitrary"),
            vmem_limit_bytes=vmem_limit),
        cost_estimate=cost,
    )(*operands)

    # Tiny scalar epilogue: combine per-core partials, divide, empty branch.
    p = partials.reshape(n_cores, 128)
    sse = jnp.sum(p[:, 0])
    rows = jnp.sum(p[:, 1])                                  # selected rows (exact in f32)
    cnt = rows * jnp.float32(d)                              # selected elements
    # precondition.sum() == 0 -> zeros(1); safe divide avoids inf/nan.
    val = jnp.where(cnt == 0.0, jnp.float32(0.0), sse / jnp.maximum(cnt, 1.0))
    return val.reshape(1).astype(out_dtype)


# ---------------------------------------------------------------------------
# JAX equivalents of the module's plumbing
# ---------------------------------------------------------------------------
class LossFlowData:
    def __init__(self, outputs, targets):
        self.outputs = outputs
        self.targets = targets


def get_flow_data(*args, **kwargs):
    if len(args) == 2 and not isinstance(args[0], LossFlowData):
        return LossFlowData(*args)
    for arg in args:
        if isinstance(arg, LossFlowData):
            return arg
    for arg in kwargs.values():
        if isinstance(arg, LossFlowData):
            return arg


def squeeze_if_needed(tensor):
    if tensor.ndim > 2:
        raise ValueError(
            f'Trying to squeeze the second dimension out of a tensor with shape: {tensor.shape}')
    if tensor.ndim == 2:
        return tensor[:, 0]
    return tensor


class BaseMetricDecorator:
    """JAX/Pallas equivalent of the torch BaseMetricDecorator (metric = MSE-mean)."""

    def __init__(self, task_name, available_func, prefix, metric):
        self.task_name = task_name
        self.available = available_func
        self.prefix = prefix
        self.metric = metric            # fused masked-metric kernel

    def __call__(self, *args, **kwargs):
        loss_flow_data = get_flow_data(*args, **kwargs)
        return self.compute_with_precondition(loss_flow_data, self.metric)

    def compute_with_precondition(self, loss_flow_data, metric):
        key = self.prefix + self.task_name
        outputs = loss_flow_data.outputs[key]
        precondition = loss_flow_data.outputs[f'precondition|{key}']
        targets = loss_flow_data.targets[key]
        # Masked selection + reduction + the precondition.sum() == 0 -> zeros(1)
        # branch are fused into the Pallas kernel / its two-scalar epilogue.
        metric_res = metric(outputs, targets, precondition)
        return self.postprocess_results(metric_res, precondition)

    def postprocess_results(self, metric_res, precondition):
        return metric_res


if __name__ == "__main__":
    def ref_masked_mse(outputs, targets, pre):
        o = outputs if outputs.ndim == 2 else outputs[:, None]
        t = targets if targets.ndim == 2 else targets[:, None]
        mm = jnp.asarray(pre).reshape(o.shape[0]).astype(jnp.float32)
        n_sel = mm.sum() * o.shape[1]
        sse = jnp.sum(((o.astype(jnp.float32) - t.astype(jnp.float32)) ** 2)
                      * mm[:, None])
        return jnp.where(n_sel == 0, 0.0, sse / jnp.maximum(n_sel, 1.0))

    keys = jax.random.split(jax.random.PRNGKey(0), 10)

    # --- case 1: lane-dense MXU-expansion path (D = 32 -> 128 lanes) --------
    N, D = 64, 32
    outputs = jax.random.normal(keys[0], (N, D), dtype=jnp.float32)
    targets = jax.random.normal(keys[1], (N, D), dtype=jnp.float32)
    precondition = jax.random.uniform(keys[2], (N, 1)) > 0.5       # bool (N, 1)

    flow = LossFlowData(
        outputs={'task': outputs, 'precondition|task': precondition},
        targets={'task': targets},
    )
    decorator = BaseMetricDecorator('task', None, '', masked_mse_metric)
    res = decorator(flow)
    jax.block_until_ready(res)
    ref = ref_masked_mse(outputs, targets, precondition)
    assert res.shape == (1,)
    assert jnp.allclose(res[0], ref, rtol=1e-5, atol=1e-6), (res, ref)

    # --- case 2: empty precondition -> zeros(1) -----------------------------
    empty_flow = LossFlowData(
        outputs={'task': outputs,
                 'precondition|task': jnp.zeros((N, 1), dtype=bool)},
        targets={'task': targets},
    )
    res_empty = decorator(empty_flow)
    jax.block_until_ready(res_empty)
    assert res_empty.shape == (1,) and float(res_empty[0]) == 0.0

    # --- case 3: ragged N, D = 48 (generalized repack: L = 384) -------------
    N2, D2 = 200, 48
    out2 = jax.random.normal(keys[3], (N2, D2), dtype=jnp.float32)
    tgt2 = jax.random.normal(keys[4], (N2, D2), dtype=jnp.float32)
    pre2 = jax.random.uniform(keys[5], (N2,)) > 0.3                # bool (N,)
    res2 = masked_mse_metric(out2, tgt2, pre2)
    jax.block_until_ready(res2)
    ref2 = ref_masked_mse(out2, tgt2, pre2)
    assert jnp.allclose(res2[0], ref2, rtol=1e-5, atol=1e-6), (res2, ref2)

    # --- case 4: 1-D inputs (d = 1, mask already lane-aligned) --------------
    N3 = 37
    out3 = jax.random.normal(keys[6], (N3,), dtype=jnp.float32)
    tgt3 = jax.random.normal(keys[7], (N3,), dtype=jnp.float32)
    pre3 = jax.random.uniform(keys[8], (N3,)) > 0.5
    res3 = masked_mse_metric(out3, tgt3, pre3)
    jax.block_until_ready(res3)
    ref3 = ref_masked_mse(out3, tgt3, pre3)
    assert jnp.allclose(res3[0], ref3, rtol=1e-5, atol=1e-6), (res3, ref3)

    # --- case 5: bf16 data, D = 8 (bf16 mask + MXU expansion, g = 16) -------
    N4, D4 = 50, 8
    out4 = jax.random.normal(keys[9], (N4, D4), dtype=jnp.bfloat16)
    tgt4 = jax.random.normal(keys[0], (N4, D4), dtype=jnp.bfloat16)
    pre4 = jax.random.uniform(keys[1], (N4,)) > 0.4
    res4 = masked_mse_metric(out4, tgt4, pre4)
    jax.block_until_ready(res4)
    ref4 = ref_masked_mse(out4, tgt4, pre4)
    assert res4.dtype == jnp.bfloat16
    assert jnp.allclose(jnp.float32(res4[0]), ref4, rtol=2e-2, atol=1e-3), (res4, ref4)

    print("KERNEL_OK")
</pallas_src>

<mosaic_0001>
module attributes {stable_mosaic.version = 11 : i64} {
  func.func @kernel(%arg0: i32, %arg1: i32, %arg2: memref<16x128xf32, #tpu.memory_space<vmem>>, %arg3: memref<16x128xf32, #tpu.memory_space<vmem>>, %arg4: memref<16x16xbf16, #tpu.memory_space<vmem>>, %arg5: memref<16x128xbf16, #tpu.memory_space<vmem>>, %arg6: memref<1x128xf32, #tpu.memory_space<vmem>>, %arg7: memref<8x128xf32, #tpu.memory_space<vmem>>, %arg8: memref<8x16xf32, #tpu.memory_space<vmem>>) attributes {dimension_semantics = [#tpu.dimension_semantics<parallel>, #tpu.dimension_semantics<arbitrary>], iteration_bounds = array<i64: 1, 1>, scalar_prefetch = 0 : i64, scratch_operands = 2 : i64, tpu.core_type = #tpu.core_type<tc>, window_params = [{transform_indices = @transform_0, window_bounds = array<i64: 16, 128>}, {transform_indices = @transform_1, window_bounds = array<i64: 16, 128>}, {transform_indices = @transform_2, window_bounds = array<i64: 16, 16>}, {pipeline_mode = #tpu.pipeline_mode<synchronous>, transform_indices = @transform_3, window_bounds = array<i64: 16, 128>}, {transform_indices = @transform_4, window_bounds = array<i64: 1, 128>}]} {
    %c0_i32 = arith.constant 0 : i32
    %0 = arith.cmpi eq, %arg1, %c0_i32 : i32
    %1 = arith.extui %0 : i1 to i32
    %c0_i32_0 = arith.constant 0 : i32
    %2 = arith.cmpi ne, %1, %c0_i32_0 : i32
    scf.if %2 {
      %cst_20 = arith.constant 0.000000e+00 : f32
      %25 = vector.broadcast %cst_20 : f32 to vector<8x128xf32>
      %c0_21 = arith.constant 0 : index
      %c0_22 = arith.constant 0 : index
      %26 = vector.load %arg7[%c0_21, %c0_22] : memref<8x128xf32, #tpu.memory_space<vmem>>, vector<8x128xf32>
      tpu.vector_store %arg7[%c0_21, %c0_22], %25 {strides = array<i32>} : memref<8x128xf32, #tpu.memory_space<vmem>>, vector<8x128xf32>,
      %cst_23 = arith.constant 0.000000e+00 : f32
      %27 = vector.broadcast %cst_23 : f32 to vector<8x16xf32>
      %c0_24 = arith.constant 0 : index
      %c0_25 = arith.constant 0 : index
      %28 = vector.load %arg8[%c0_24, %c0_25] : memref<8x16xf32, #tpu.memory_space<vmem>>, vector<8x16xf32>
      tpu.vector_store %arg8[%c0_24, %c0_25], %27 {strides = array<i32>} : memref<8x16xf32, #tpu.memory_space<vmem>>, vector<8x16xf32>,
    } else {
    }
    %c0 = arith.constant 0 : index
    %c0_1 = arith.constant 0 : index
    %3 = vector.load %arg2[%c0, %c0_1] : memref<16x128xf32, #tpu.memory_space<vmem>>, vector<16x128xf32>
    %c0_2 = arith.constant 0 : index
    %c0_3 = arith.constant 0 : index
    %4 = vector.load %arg3[%c0_2, %c0_3] : memref<16x128xf32, #tpu.memory_space<vmem>>, vector<16x128xf32>
    %5 = arith.subf %3, %4 : vector<16x128xf32>
    %6 = arith.mulf %5, %5 : vector<16x128xf32>
    %c0_4 = arith.constant 0 : index
    %c0_5 = arith.constant 0 : index
    %7 = vector.load %arg4[%c0_4, %c0_5] : memref<16x16xbf16, #tpu.memory_space<vmem>>, vector<16x16xbf16>
    %c0_6 = arith.constant 0 : index
    %c0_7 = arith.constant 0 : index
    %8 = vector.load %arg5[%c0_6, %c0_7] : memref<16x128xbf16, #tpu.memory_space<vmem>>, vector<16x128xbf16>
    %cst = arith.constant dense<0.000000e+00> : vector<16x128xf32>
    %9 = tpu.matmul %7, %8, %cst {dimension_numbers = #tpu.dot_dimension_numbers<[1], [0], [0], [1], [0, 0, 1, 1], [], []>} : vector<16x16xbf16>, vector<16x128xbf16>, vector<16x128xf32> -> vector<16x128xf32>
    %10 = arith.mulf %6, %9 : vector<16x128xf32>
    %c0_8 = arith.constant 0 : index
    %c0_9 = arith.constant 0 : index
    %11 = vector.load %arg7[%c0_8, %c0_9] : memref<8x128xf32, #tpu.memory_space<vmem>>, vector<8x128xf32>
    %12 = vector.shape_cast %10 : vector<16x128xf32> to vector<2x8x128xf32>
    %cst_10 = arith.constant dense<0.000000e+00> : vector<8x128xf32>
    %13 = vector.multi_reduction <add>, %12, %cst_10 [0] : vector<2x8x128xf32> to vector<8x128xf32>
    %14 = arith.addf %11, %13 : vector<8x128xf32>
    %c0_11 = arith.constant 0 : index
    %c0_12 = arith.constant 0 : index
    %15 = vector.load %arg7[%c0_11, %c0_12] : memref<8x128xf32, #tpu.memory_space<vmem>>, vector<8x128xf32>
    tpu.vector_store %arg7[%c0_11, %c0_12], %14 {strides = array<i32>} : memref<8x128xf32, #tpu.memory_space<vmem>>, vector<8x128xf32>,
    %16 = arith.extf %7 : vector<16x16xbf16> to vector<16x16xf32>
    %c0_13 = arith.constant 0 : index
    %c0_14 = arith.constant 0 : index
    %17 = vector.load %arg8[%c0_13, %c0_14] : memref<8x16xf32, #tpu.memory_space<vmem>>, vector<8x16xf32>
    %18 = vector.shape_cast %16 : vector<16x16xf32> to vector<2x8x16xf32>
    %cst_15 = arith.constant dense<0.000000e+00> : vector<8x16xf32>
    %19 = vector.multi_reduction <add>, %18, %cst_15 [0] : vector<2x8x16xf32> to vector<8x16xf32>
    %20 = arith.addf %17, %19 : vector<8x16xf32>
    %c0_16 = arith.constant 0 : index
    %c0_17 = arith.constant 0 : index
    %21 = vector.load %arg8[%c0_16, %c0_17] : memref<8x16xf32, #tpu.memory_space<vmem>>, vector<8x16xf32>
    tpu.vector_store %arg8[%c0_16, %c0_17], %20 {strides = array<i32>} : memref<8x16xf32, #tpu.memory_space<vmem>>, vector<8x16xf32>,
    %c0_i32_18 = arith.constant 0 : i32
    %22 = arith.cmpi eq, %arg1, %c0_i32_18 : i32
    %23 = arith.extui %22 : i1 to i32
    %c0_i32_19 = arith.constant 0 : i32
    %24 = arith.cmpi ne, %23, %c0_i32_19 : i32
    scf.if %24 {
      %c0_20 = arith.constant 0 : index
      %c0_21 = arith.constant 0 : index
      %25 = vector.load %arg7[%c0_20, %c0_21] : memref<8x128xf32, #tpu.memory_space<vmem>>, vector<8x128xf32>
      %26 = vector.shape_cast %25 : vector<8x128xf32> to vector<1x8x128xf32>
      %cst_22 = arith.constant dense<0.000000e+00> : vector<1xf32>
      %27 = vector.multi_reduction <add>, %26, %cst_22 [1, 2] : vector<1x8x128xf32> to vector<1xf32>
      %28 = vector.shape_cast %27 : vector<1xf32> to vector<1x1x1xf32>
      %29 = vector.extract %28[0, 0, 0] : f32 from vector<1x1x1xf32>
      %c0_23 = arith.constant 0 : index
      %c0_24 = arith.constant 0 : index
      %30 = vector.load %arg8[%c0_23, %c0_24] : memref<8x16xf32, #tpu.memory_space<vmem>>, vector<8x16xf32>
      %31 = vector.shape_cast %30 : vector<8x16xf32> to vector<1x8x16xf32>
      %cst_25 = arith.constant dense<0.000000e+00> : vector<1xf32>
      %32 = vector.multi_reduction <add>, %31, %cst_25 [1, 2] : vector<1x8x16xf32> to vector<1xf32>
      %33 = vector.shape_cast %32 : vector<1xf32> to vector<1x1x1xf32>
      %34 = vector.extract %33[0, 0, 0] : f32 from vector<1x1x1xf32>
      %35 = tpu.iota {dimensions = array<i32: 1>} : vector<1x128xi32>
      %c0_i32_26 = arith.constant 0 : i32
      %36 = vector.broadcast %c0_i32_26 : i32 to vector<1x128xi32>
      %37 = arith.cmpi eq, %35, %36 : vector<1x128xi32>
      %c1_i32 = arith.constant 1 : i32
      %38 = vector.broadcast %c1_i32 : i32 to vector<1x128xi32>
      %39 = arith.cmpi eq, %35, %38 : vector<1x128xi32>
      %cst_27 = arith.constant 0.000000e+00 : f32
      %40 = vector.broadcast %34 : f32 to vector<1x128xf32>
      %41 = vector.broadcast %cst_27 : f32 to vector<1x128xf32>
      %42 = arith.select %39, %40, %41 : vector<1x128xi1>, vector<1x128xf32>
      %43 = vector.broadcast %29 : f32 to vector<1x128xf32>
      %44 = arith.select %37, %43, %42 : vector<1x128xi1>, vector<1x128xf32>
      %c0_28 = arith.constant 0 : index
      %c0_29 = arith.constant 0 : index
      %45 = vector.load %arg6[%c0_28, %c0_29] : memref<1x128xf32, #tpu.memory_space<vmem>>, vector<1x128xf32>
      tpu.vector_store %arg6[%c0_28, %c0_29], %44 {strides = array<i32>} : memref<1x128xf32, #tpu.memory_space<vmem>>, vector<1x128xf32>,
    } else {
    }
    return
  }
  func.func @transform_0(%arg0: i32, %arg1: i32) -> (i32, i32) {
    %c1_i32 = arith.constant 1 : i32
    %0 = arith.muli %arg0, %c1_i32 : i32
    %1 = arith.addi %0, %arg1 : i32
    %c0_i32 = arith.constant 0 : i32
    %c0_i32_0 = arith.constant 0 : i32
    return %1, %c0_i32 : i32, i32
  }
  func.func @transform_1(%arg0: i32, %arg1: i32) -> (i32, i32) {
    %c1_i32 = arith.constant 1 : i32
    %0 = arith.muli %arg0, %c1_i32 : i32
    %1 = arith.addi %0, %arg1 : i32
    %c0_i32 = arith.constant 0 : i32
    %c0_i32_0 = arith.constant 0 : i32
    return %1, %c0_i32 : i32, i32
  }
  func.func @transform_2(%arg0: i32, %arg1: i32) -> (i32, i32) {
    %c1_i32 = arith.constant 1 : i32
    %0 = arith.muli %arg0, %c1_i32 : i32
    %1 = arith.addi %0, %arg1 : i32
    %c0_i32 = arith.constant 0 : i32
    %c0_i32_0 = arith.constant 0 : i32
    return %1, %c0_i32 : i32, i32
  }
  func.func @transform_3(%arg0: i32, %arg1: i32) -> (i32, i32) {
    %c0_i32 = arith.constant 0 : i32
    %c0_i32_0 = arith.constant 0 : i32
    %c0_i32_1 = arith.constant 0 : i32
    return %c0_i32, %c0_i32_0 : i32, i32
  }
  func.func @transform_4(%arg0: i32, %arg1: i32) -> (i32, i32) {
    %c0_i32 = arith.constant 0 : i32
    %c0_i32_0 = arith.constant 0 : i32
    return %c0_i32, %arg0 : i32, i32
  }
}

</mosaic_0001>

<bundles_post_ra>
// kernel: tpu_custom_call.1
= control target key start
LH: loop header
LB: loop body
LE: loop exit
PB: predicated region body
PF: predicated region fallthrough
CT: control target
= control target key end

     0   :  { %9 = vsyncpa [#allocation5], 0  ;;  %s437_s0 = inlined_call_operand.hbm [shape: f32[16,128], index: 0, kind: input, shape index: {}]   ;;  %s438_s1 = inlined_call_operand.hbm [shape: f32[16,128], index: 1, kind: input, shape index: {}]   ;;  %s439_s2 = inlined_call_operand.hbm [shape: bf16[16,16], index: 2, kind: input, shape index: {}]   ;;  %s440_s3 = inlined_call_operand.vmem [shape: bf16[16,128], index: 3, kind: input, shape index: {}]   ;;  %s441_s4 = inlined_call_operand.hbm [shape: f32[1,128], index: 4, kind: output, shape index: {}]  }
   0x1   :  { %10 = vsyncpa [#allocation8], 0 }
   0x2   :  { %11 = vsyncpa [#allocation6], 0  ;;  %s338_s15 = smov [#allocation7]   ;;  %s339_s17 = smov [#allocation4]  }
   0x3   :  { %s37_s16 = sshll.u32 %s338_s15, 4  ;;  %s21_s18 = sshll.u32 %s339_s17, 4  ;;  %s38_s16 = int_to_ptr.vmem [resolvable:$true] %s37_s16  ;;  %s373_s18 = int_to_ptr.vmem [resolvable:$true] %s21_s18 }
   0x4   :  { %s244_s21 = scalar_lea.hbm %s438_s1, 256 }
   0x5   :  { %p245_p0 = scmp.ne.s32.totalorder %s438_s1, %s244_s21  ;;  %p248_p1 = scmp.lt.u32.totalorder %s244_s21, %s438_s1 }
   0x7   :  { %p250_p2 = pnand %p248_p1, %p245_p0 }
   0x9   :  { %253 = shalt.err (!%p250_p2)
}
   0xa   :  { %s254_s26 = scalar_lea.vmem %s38_s16, 256  ;;  %p259_p4 = scmp.lt.s32.totalorder %s38_s16, %s38_s16 }
   0xb   :  { %p255_p3 = scmp.ne.s32.totalorder %s38_s16, %s254_s26  ;;  %p260_p5 = scmp.lt.s32.totalorder %s254_s26, %s254_s26 }
   0xd   :  { %p261_p6 = por %p260_p5, %p259_p4 }
   0xf   :  { %p262_p7 = pnand %p261_p6, %p255_p3 }
  0x11   :  { %265 = shalt.err (!%p262_p7)
}
  0x12   :  { %s340_s27 = smov 128   ;;  %s341_s28 = smov 8  }
  0x13   :  { %43 = dma.hbm_to_vmem [thread:$0]  %s438_s1, 256, %s38_s16, [#allocation8], %s340_s27, %s340_s27, %s341_s28  }
  0x14   :  { %s266_s7 = scalar_lea.hbm %s437_s0, 256 }
  0x15   :  { %p267_p8 = scmp.ne.s32.totalorder %s437_s0, %s266_s7  ;;  %p270_p9 = scmp.lt.u32.totalorder %s266_s7, %s437_s0 }
  0x17   :  { %p272_p10 = pnand %p270_p9, %p267_p8 }
  0x19   :  { %275 = shalt.err (!%p272_p10)
}
  0x1a   :  { %s276_s12 = scalar_lea.vmem %s373_s18, 256  ;;  %p281_p12 = scmp.lt.s32.totalorder %s373_s18, %s373_s18 }
  0x1b   :  { %p277_p11 = scmp.ne.s32.totalorder %s373_s18, %s276_s12  ;;  %p282_p13 = scmp.lt.s32.totalorder %s276_s12, %s276_s12 }
  0x1d   :  { %p283_p0 = por %p282_p13, %p281_p12 }
  0x1f   :  { %p284_p1 = pnand %p283_p0, %p277_p11 }
  0x21   :  { %287 = shalt.err (!%p284_p1)
}
  0x22   :  { %27 = dma.hbm_to_vmem [thread:$0]  %s437_s0, 256, %s373_s18, [#allocation5], %s340_s27, %s340_s27, %s341_s28  }
  0x23   :  { %s342_s14 = smov [#allocation9]   ;;  %s288_s19 = scalar_lea.hbm %s439_s2, 128 }
  0x24   :  { %s53_s15 = sshll.u32 %s342_s14, 4  ;;  %p289_p2 = scmp.ne.s32.totalorder %s439_s2, %s288_s19  ;;  %s54_s15 = int_to_ptr.vmem [resolvable:$true] %s53_s15 }
  0x25   :  { %p292_p3 = scmp.lt.u32.totalorder %s288_s19, %s439_s2 }
  0x27   :  { %p294_p4 = pnand %p292_p3, %p289_p2 }
  0x29   :  { %297 = shalt.err (!%p294_p4)
}
  0x2a   :  { %s298_s24 = scalar_lea.vmem %s54_s15, 128  ;;  %p303_p6 = scmp.lt.s32.totalorder %s54_s15, %s54_s15 }
  0x2b   :  { %p299_p5 = scmp.ne.s32.totalorder %s54_s15, %s298_s24  ;;  %p304_p7 = scmp.lt.s32.totalorder %s298_s24, %s298_s24 }
  0x2d   :  { %p305_p8 = por %p304_p7, %p303_p6 }
  0x2f   :  { %p306_p9 = pnand %p305_p8, %p299_p5 }
  0x31   :  { %309 = shalt.err (!%p306_p9)
}
  0x32   :  { %s343_s0 = smov 64   ;;  %s344_s18 = smov 4  }
  0x33   :  { %59 = dma.hbm_to_vmem [thread:$0]  %s439_s2, 128, %s54_s15, [#allocation8], %s343_s0, %s343_s0, %s344_s18  }
  0x34   :  { %332 = dma.done.wait [#allocation5], 256  }
  0x35   :  { %333 = vsyncadd [#allocation5], 4294967040 }
  0x36   :  { %334 = dma.done.wait [#allocation8], 384  }
  0x37   :  { %335 = vsyncadd [#allocation8], 4294966912  ;;  %vm83_vm0 = vcmask 130048   ;;  %v345_v0 = vmov 0.0   ;;  %vm346_vm1 = vmmov 0   ;;  %v241_v1 = vld [vmem:[%s440_s3] sm:$0xff]   ;;  %v191_v41 = vlaneseq }
  0x38   :  { %84 = vst.msk [vmem:[#allocation3] sm:$0xff] %vm83_vm0, %v345_v0  ;;  %221 = vmatprep.subr.bf16.mxu0 %v345_v0  ;;  %223 = vmatprep.mubr.msk.bf16.mxu0 %vm346_vm1, %v345_v0  ;;  %v93_v2 = vld [vmem:[#allocation9] sm:$0xff]   ;;  %v87_v11 = vld [vmem:[#allocation7] sm:$0xff]  ;;  %v86_v12 = vld [vmem:[#allocation4 + $0x8] sm:$0xff]  ;;  %s347_s3 = smov [#allocation10]  }
  0x39   :  { %222 = vmatpush3.bf16.msra.mxu0 %v241_v1  ;;  %v159_v3 = vunpack.c.l.bf16 %v93_v2  ;;  %v160_v4 = vunpack.c.h.bf16 %v93_v2  ;;  %v85_v10 = vld [vmem:[#allocation4] sm:$0xff]  ;;  %v88_v13 = vld [vmem:[#allocation7 + $0x8] sm:$0xff]  ;;  %v192_v42 = vand.u32 127, %v191_v41  ;;  %s206_s29 = sshll.u32 %s347_s3, 4  ;;  %s207_s29 = int_to_ptr.vmem [resolvable:$true] %s206_s29 }
  0x3a   :  { %v89_v14 = vsub.f32 %v85_v10, %v87_v11  ;;  %v90_v15 = vsub.f32 %v86_v12, %v88_v13  ;;  %s310_s5 = scalar_lea.vmem %s207_s29, 16  ;;  %s314_s6 = scalar_lea.vmem %s207_s29, 32 }
  0x3b   :  { %v162_v6 = vsel %vm83_vm0, %v159_v3, 0.0  ;;  %v163_v7 = vsel %vm83_vm0, %v160_v4, 0.0  ;;  %vm194_vm2 = vcmp.eq.s32.totalorder %v192_v42, 1  ;;  %vm193_vm3 = vcmp.eq.s32.totalorder %v192_v42, 0  ;;  %p311_p10 = scmp.ne.s32.totalorder %s207_s29, %s310_s5  ;;  %p315_p11 = scmp.lt.s32.totalorder %s207_s29, %s207_s29 }
  0x3c   :  { %224 = vmatmul.mubr.msk.bf16.vlgmr.msra.gmra.mrb[0].mxu0 %vm83_vm0, %v93_v2  ;;  %v164_v8 = vadd.f32 %v163_v7, %v162_v6  ;;  %v91_v16 = vmul.f32 %v89_v14, %v89_v14  ;;  %v92_v17 = vmul.f32 %v90_v15, %v90_v15  ;;  %p316_p12 = scmp.lt.s32.totalorder %s314_s6, %s310_s5 }
  0x3e   :  { %p317_p13 = por %p316_p12, %p315_p11 }
  0x3f   :  { %v161_v5 = vld [vmem:[#allocation3] sm:$0xff] }
  0x40   :  { %v165_v9 = vadd.f32 %v164_v8, %v161_v5  ;;  %p318_p0 = pnand %p317_p13, %p311_p10 }
  0x42   :  { %166 = vst.msk [vmem:[#allocation3] sm:$0xff] %vm83_vm0, %v165_v9 }
  0x49   :  { %v180_v25 = vld [vmem:[#allocation3] sm:$0xff] }
  0x4a   :  { %v181_v26 = vsel %vm83_vm0, %v180_v25, 0.0 }
 0x10f   :  { %v146_v18 = vpop.f32.mrb[0].mxu0 }
 0x110   :  { %v225_v19 = vpop.f32.mrb[1].mxu0  ;;  %v153_v21 = vmul.f32 %v146_v18, %v91_v16 }
 0x111   :  { %v149_v20 = vpop.f32.mrb[2].mxu0 }
 0x112   :  { %v154_v22 = vmul.f32 %v149_v20, %v92_v17  ;;  %v226_v23 = vpop.f32.mrb[3].mxu0 }
 0x114   :  { %v156_v24 = vadd.f32 %v154_v22, %v153_v21 }
 0x116   :  { %171 = vadd.xlane.f32.xlu0 %v156_v24 }
 0x11a   :  { %182 = vadd.xlane.f32.xlu0 %v181_v26 }
 0x1a3   :  { %v172_v27 = vpop.xlane.xlu0 %171 }
 0x1a4   :  { %v173_v28 = vrot.slane %v172_v27, 4 }
 0x1a6   :  { %v174_v29 = vadd.f32 %v173_v28, %v172_v27 }
 0x1a7   :  { %v183_v30 = vpop.xlane.xlu0 %182 }
 0x1a8   :  { %v175_v31 = vrot.slane %v174_v29, 2  ;;  %v184_v32 = vrot.slane %v183_v30, 4 }
 0x1aa   :  { %v185_v33 = vadd.f32 %v184_v32, %v183_v30  ;;  %v176_v34 = vadd.f32 %v175_v31, %v174_v29 }
 0x1ac   :  { %v186_v35 = vrot.slane %v185_v33, 2  ;;  %v177_v36 = vrot.slane %v176_v34, 1 }
 0x1ae   :  { %v187_v37 = vadd.f32 %v186_v35, %v185_v33  ;;  %v178_v38 = vadd.f32 %v177_v36, %v176_v34 }
 0x1b0   :  { %227 = vpush %v178_v38  ;;  %v188_v39 = vrot.slane %v187_v37, 1 }
 0x1b2   :  { %v189_v40 = vadd.f32 %v188_v39, %v187_v37 }
 0x1b4   :  { %229 = vpush %v189_v40 }
 0x1e1   :  { %s228_s2 = spop %227 }
 0x1e2   :  { %v197_v44 = vstv %s228_s2 }
 0x1e5   :  { %s230_s30 = spop %229 }
 0x1e6   :  { %v195_v43 = vstv %s230_s30 }
 0x1e7   :  { %v196_v45 = vsel %vm194_vm2, %v195_v43, 0.0 }
 0x1e8   :  { %v198_v46 = vsel %vm193_vm3, %v197_v44, %v196_v45 }
 0x1e9   :  { %199 = vst [vmem:[#allocation10] sm:$0x1] %v198_v46 }
 0x1ea   :  { %321 = shalt.err (!%p318_p0)
}
 0x1eb   :  { %s322_s9 = scalar_lea.hbm %s441_s4, 16 }
 0x1ec   :  { %p323_p1 = scmp.ne.s32.totalorder %s441_s4, %s322_s9  ;;  %p326_p2 = scmp.lt.u32.totalorder %s322_s9, %s441_s4 }
 0x1ee   :  { %p328_p3 = pnand %p326_p2, %p323_p1 }
 0x1f0   :  { %331 = shalt.err (!%p328_p3)
}
 0x1f1   :  { %209 = dma.vmem_to_hbm [thread:$0]  %s207_s29, 16, %s441_s4, [#allocation6]  }
 0x1f2   :  { %336 = dma.done.wait [#allocation6], 16  }
 0x1f3   :  { %337 = vsyncadd [#allocation6], 4294967280 }
 0x1f4   :  { %213 = vsyncpa [#allocation5], 1 }
 0x1f5   :  { %214 = vsyncpa [#allocation8], 1 }
 0x1f6   :  { %215 = vsyncpa [#allocation6], 1 }

</bundles_post_ra>
